<compile_context>
chip_gen: v6e
topology: v6e:2x2x1
jax: 0.10.0
libtpu: 0.0.40
codegen_flags: <defaults>
</compile_context>

<pallas_src>
import jax
import jax.numpy as jnp
from jax.experimental import pallas as pl
from jax.experimental.pallas import tpu as pltpu

_LANE = 128
_SUBLANE = 8
_NEG_BIG = -1e30  # bias for padded classes -> exp underflows to exactly 0 (f32 logits)


def _round_up(x, m):
    return (x + m - 1) // m * m


def _mlp_kernel(x_ref,
                w1_ref, b1_ref,
                w2_ref, b2_ref,
                w3_ref, b3_ref,
                w4_ref, b4_ref,
                o_ref):
    # fc1 + relu  (bf16 dot inputs, f32 MXU accumulate, f32 elementwise)
    h = jnp.dot(x_ref[...].astype(jnp.bfloat16), w1_ref[...],
                preferred_element_type=jnp.float32) + b1_ref[...]
    h = jnp.maximum(h, 0.0)
    # fc2 + relu
    h = jnp.dot(h.astype(jnp.bfloat16), w2_ref[...],
                preferred_element_type=jnp.float32) + b2_ref[...]
    h = jnp.maximum(h, 0.0)
    # fc3 + relu (output width padded to 128 lanes; padded cols are exactly 0)
    h = jnp.dot(h.astype(jnp.bfloat16), w3_ref[...],
                preferred_element_type=jnp.float32) + b3_ref[...]
    h = jnp.maximum(h, 0.0)
    # fc4 (classes padded to 128 lanes) + softmax over the class axis (f32 throughout)
    logits = jnp.dot(h.astype(jnp.bfloat16), w4_ref[...],
                     preferred_element_type=jnp.float32) + b4_ref[...]
    m = jnp.max(logits, axis=-1, keepdims=True)
    e = jnp.exp(logits - m)                        # padded cols: exp(-1e30 - m) == 0
    denom = jnp.sum(e, axis=-1, keepdims=True)
    o_ref[...] = (e / denom).astype(o_ref.dtype)   # exact normalization (rows sum to 1)


def classifier_music_genres(x, params, *, block_b=1024, out_dtype=jnp.float32):
    """Forward pass of ClassifierMusicGenres as a single tiled Pallas kernel.

    x: (B, inputSize), float32 or bfloat16 (bf16 input halves the x DMA per tile).
    params: dict with w1..w4 stored transposed (in, out) in bf16 and b1..b4 (1, out) f32.
    Returns (B, numclasses) softmax probabilities in `out_dtype` (default float32, which
    matches the PyTorch module; bfloat16 cuts output HBM traffic in half for serving).
    """
    B, in_size = x.shape
    h1 = params["w1"].shape[1]
    h2 = params["w2"].shape[1]
    h3 = params["w3"].shape[1]
    nc = params["w4"].shape[1]
    h3_pad = _round_up(max(h3, _LANE), _LANE)
    nc_pad = _round_up(max(nc, _LANE), _LANE)

    # Batch tile: multiple of 8, capped at block_b. When there is room for >= 2 tiles,
    # also cap at ceil(B/2) so the grid has >= 2 steps (lets v7x's 2 TCs both engage).
    rows = _round_up(B, _SUBLANE)
    tb = min(block_b, rows)
    if rows > _SUBLANE:
        tb = min(tb, _round_up(-(-B // 2), _SUBLANE))
    b_pad = _round_up(B, tb)
    if b_pad != B:
        x = jnp.pad(x, ((0, b_pad - B), (0, 0)))

    # Lane-dense padding of the 64-wide fc3 output (bit-identical: padded cols are 0).
    w3, b3, w4, b4 = params["w3"], params["b3"], params["w4"], params["b4"]
    if h3_pad != h3:
        w3 = jnp.pad(w3, ((0, 0), (0, h3_pad - h3)))
        b3 = jnp.pad(b3, ((0, 0), (0, h3_pad - h3)))
        w4 = jnp.pad(w4, ((0, h3_pad - h3), (0, 0)))
    # Lane-dense padded fc4: zero weight columns, big-negative bias columns.
    if nc_pad != nc:
        w4 = jnp.pad(w4, ((0, 0), (0, nc_pad - nc)))
        b4 = jnp.pad(b4, ((0, 0), (0, nc_pad - nc)), constant_values=_NEG_BIG)

    weights = (params["w1"], params["b1"],
               params["w2"], params["b2"],
               w3, b3,
               w4, b4)

    grid = (b_pad // tb,)
    # Full-shape blocks with a constant index_map -> VMEM-resident, DMA'd once.
    # (Weights total <1 MiB, so default double-buffering is negligible; pl.Buffered(1)
    #  would halve their VMEM footprint if in_size ever grows large.)
    resident = lambda arr: pl.BlockSpec(arr.shape, lambda i: (0, 0))

    # Cost estimate derived from the actual padded shapes.
    flops = 2 * b_pad * (in_size * h1 + h1 * h2 + h2 * h3_pad + h3_pad * nc_pad)
    bytes_accessed = (x.size * x.dtype.itemsize
                      + sum(a.size * a.dtype.itemsize for a in weights)
                      + b_pad * nc_pad * jnp.dtype(out_dtype).itemsize)

    out = pl.pallas_call(
        _mlp_kernel,
        out_shape=jax.ShapeDtypeStruct((b_pad, nc_pad), out_dtype),
        grid=grid,
        in_specs=[pl.BlockSpec((tb, in_size), lambda i: (i, 0))]
                 + [resident(a) for a in weights],
        out_specs=pl.BlockSpec((tb, nc_pad), lambda i: (i, 0)),
        compiler_params=pltpu.CompilerParams(
            dimension_semantics=("parallel",),
            vmem_limit_bytes=32 * 1024 * 1024),
        cost_estimate=pl.CostEstimate(
            flops=flops,
            transcendentals=b_pad * nc_pad,
            bytes_accessed=bytes_accessed),
    )(x, *weights)

    # Under an outer jit this slice fuses with consumers; returning the padded array
    # directly avoids the copy entirely for latency-critical serving.
    return out[:B, :nc]


def init_params(key, input_size, numclasses):
    """Synthetic init matching the PyTorch module's shapes.

    PyTorch nn.Linear(in, out) has weight (out, in), bias (out,). We store weights
    transposed as (in, out) and in bf16 (MXU inputs); biases stay f32.
    """
    dims = [(input_size, 512), (512, 256), (256, 64), (64, numclasses)]
    params = {}
    for i, (fan_in, fan_out) in enumerate(dims, start=1):
        key, kw, kb = jax.random.split(key, 3)
        bound = 1.0 / float(fan_in) ** 0.5
        params[f"w{i}"] = jax.random.uniform(
            kw, (fan_in, fan_out), jnp.float32,
            minval=-bound, maxval=bound).astype(jnp.bfloat16)
        params[f"b{i}"] = jax.random.uniform(
            kb, (1, fan_out), jnp.float32, minval=-bound, maxval=bound)
    return params


def reference_forward(x, params):
    """Pure-JAX reference with the same bf16-dot / f32-accumulate math as the kernel."""
    def dot(a, w):
        return jnp.dot(a.astype(jnp.bfloat16), w, preferred_element_type=jnp.float32)
    h = jnp.maximum(dot(x, params["w1"]) + params["b1"], 0.0)
    h = jnp.maximum(dot(h, params["w2"]) + params["b2"], 0.0)
    h = jnp.maximum(dot(h, params["w3"]) + params["b3"], 0.0)
    logits = dot(h, params["w4"]) + params["b4"]
    return jax.nn.softmax(logits, axis=1)


if __name__ == "__main__":
    key = jax.random.PRNGKey(0)
    batch, input_size, numclasses = 8, 128, 10

    key, kx = jax.random.split(key)
    x = jax.random.normal(kx, (batch, input_size), jnp.float32)
    params = init_params(key, input_size, numclasses)

    out = jax.block_until_ready(classifier_music_genres(x, params))
    ref = reference_forward(x, params)
    assert out.shape == (batch, numclasses) and out.dtype == jnp.float32
    assert jnp.allclose(out, ref, atol=5e-3), "mismatch vs pure-JAX reference"
    assert jnp.allclose(jnp.sum(out, axis=1), 1.0, atol=1e-3), "softmax rows must sum to 1"

    # Exercise multi-tile batch grid + row padding (260 rows -> 3 tiles of 128).
    key, kx2 = jax.random.split(key)
    x2 = jax.random.normal(kx2, (260, input_size), jnp.float32)
    out2 = jax.block_until_ready(classifier_music_genres(x2, params, block_b=128))
    ref2 = reference_forward(x2, params)
    assert out2.shape == (260, numclasses)
    assert jnp.allclose(out2, ref2, atol=5e-3), "mismatch vs pure-JAX reference (tiled)"
    assert jnp.allclose(jnp.sum(out2, axis=1), 1.0, atol=1e-3), "tiled rows must sum to 1"

    # Optional bandwidth-saving bf16 output path (softmax math stays f32).
    out3 = jax.block_until_ready(
        classifier_music_genres(x, params, out_dtype=jnp.bfloat16))
    assert out3.dtype == jnp.bfloat16
    assert jnp.allclose(out3.astype(jnp.float32), ref, atol=1e-2), "bf16 output mismatch"

    print("KERNEL_OK")
</pallas_src>

<mosaic_0001>
module attributes {stable_mosaic.version = 11 : i64} {
  func.func @_mlp_kernel(%arg0: i32, %arg1: memref<8x128xf32, #tpu.memory_space<vmem>>, %arg2: memref<128x512xbf16, #tpu.memory_space<vmem>>, %arg3: memref<1x512xf32, #tpu.memory_space<vmem>>, %arg4: memref<512x256xbf16, #tpu.memory_space<vmem>>, %arg5: memref<1x256xf32, #tpu.memory_space<vmem>>, %arg6: memref<256x128xbf16, #tpu.memory_space<vmem>>, %arg7: memref<1x128xf32, #tpu.memory_space<vmem>>, %arg8: memref<128x128xbf16, #tpu.memory_space<vmem>>, %arg9: memref<1x128xf32, #tpu.memory_space<vmem>>, %arg10: memref<8x128xf32, #tpu.memory_space<vmem>>) attributes {dimension_semantics = [#tpu.dimension_semantics<parallel>], iteration_bounds = array<i64: 1>, scalar_prefetch = 0 : i64, scratch_operands = 0 : i64, tpu.core_type = #tpu.core_type<tc>, window_params = [{transform_indices = @transform_0, window_bounds = array<i64: 8, 128>}, {pipeline_mode = #tpu.pipeline_mode<synchronous>, transform_indices = @transform_1, window_bounds = array<i64: 128, 512>}, {pipeline_mode = #tpu.pipeline_mode<synchronous>, transform_indices = @transform_2, window_bounds = array<i64: 1, 512>}, {pipeline_mode = #tpu.pipeline_mode<synchronous>, transform_indices = @transform_3, window_bounds = array<i64: 512, 256>}, {pipeline_mode = #tpu.pipeline_mode<synchronous>, transform_indices = @transform_4, window_bounds = array<i64: 1, 256>}, {pipeline_mode = #tpu.pipeline_mode<synchronous>, transform_indices = @transform_5, window_bounds = array<i64: 256, 128>}, {pipeline_mode = #tpu.pipeline_mode<synchronous>, transform_indices = @transform_6, window_bounds = array<i64: 1, 128>}, {pipeline_mode = #tpu.pipeline_mode<synchronous>, transform_indices = @transform_7, window_bounds = array<i64: 128, 128>}, {pipeline_mode = #tpu.pipeline_mode<synchronous>, transform_indices = @transform_8, window_bounds = array<i64: 1, 128>}, {transform_indices = @transform_9, window_bounds = array<i64: 8, 128>}]} {
    %c0 = arith.constant 0 : index
    %c0_0 = arith.constant 0 : index
    %0 = vector.load %arg1[%c0, %c0_0] : memref<8x128xf32, #tpu.memory_space<vmem>>, vector<8x128xf32>
    %1 = arith.truncf %0 : vector<8x128xf32> to vector<8x128xbf16>
    %c0_1 = arith.constant 0 : index
    %c0_2 = arith.constant 0 : index
    %2 = vector.load %arg2[%c0_1, %c0_2] : memref<128x512xbf16, #tpu.memory_space<vmem>>, vector<128x512xbf16>
    %cst = arith.constant dense<0.000000e+00> : vector<8x512xf32>
    %3 = tpu.matmul %1, %2, %cst {dimension_numbers = #tpu.dot_dimension_numbers<[1], [0], [0], [1], [0, 0, 1, 1], [], []>} : vector<8x128xbf16>, vector<128x512xbf16>, vector<8x512xf32> -> vector<8x512xf32>
    %c0_3 = arith.constant 0 : index
    %c0_4 = arith.constant 0 : index
    %4 = vector.load %arg3[%c0_3, %c0_4] : memref<1x512xf32, #tpu.memory_space<vmem>>, vector<1x512xf32>
    %5 = vector.broadcast %4 : vector<1x512xf32> to vector<8x512xf32>
    %6 = arith.addf %3, %5 : vector<8x512xf32>
    %cst_5 = arith.constant 0.000000e+00 : f32
    %7 = vector.broadcast %cst_5 : f32 to vector<8x512xf32>
    %8 = arith.maximumf %6, %7 : vector<8x512xf32>
    %9 = arith.truncf %8 : vector<8x512xf32> to vector<8x512xbf16>
    %c0_6 = arith.constant 0 : index
    %c0_7 = arith.constant 0 : index
    %10 = vector.load %arg4[%c0_6, %c0_7] : memref<512x256xbf16, #tpu.memory_space<vmem>>, vector<512x256xbf16>
    %cst_8 = arith.constant dense<0.000000e+00> : vector<8x256xf32>
    %11 = tpu.matmul %9, %10, %cst_8 {dimension_numbers = #tpu.dot_dimension_numbers<[1], [0], [0], [1], [0, 0, 1, 1], [], []>} : vector<8x512xbf16>, vector<512x256xbf16>, vector<8x256xf32> -> vector<8x256xf32>
    %c0_9 = arith.constant 0 : index
    %c0_10 = arith.constant 0 : index
    %12 = vector.load %arg5[%c0_9, %c0_10] : memref<1x256xf32, #tpu.memory_space<vmem>>, vector<1x256xf32>
    %13 = vector.broadcast %12 : vector<1x256xf32> to vector<8x256xf32>
    %14 = arith.addf %11, %13 : vector<8x256xf32>
    %cst_11 = arith.constant 0.000000e+00 : f32
    %15 = vector.broadcast %cst_11 : f32 to vector<8x256xf32>
    %16 = arith.maximumf %14, %15 : vector<8x256xf32>
    %17 = arith.truncf %16 : vector<8x256xf32> to vector<8x256xbf16>
    %c0_12 = arith.constant 0 : index
    %c0_13 = arith.constant 0 : index
    %18 = vector.load %arg6[%c0_12, %c0_13] : memref<256x128xbf16, #tpu.memory_space<vmem>>, vector<256x128xbf16>
    %cst_14 = arith.constant dense<0.000000e+00> : vector<8x128xf32>
    %19 = tpu.matmul %17, %18, %cst_14 {dimension_numbers = #tpu.dot_dimension_numbers<[1], [0], [0], [1], [0, 0, 1, 1], [], []>} : vector<8x256xbf16>, vector<256x128xbf16>, vector<8x128xf32> -> vector<8x128xf32>
    %c0_15 = arith.constant 0 : index
    %c0_16 = arith.constant 0 : index
    %20 = vector.load %arg7[%c0_15, %c0_16] : memref<1x128xf32, #tpu.memory_space<vmem>>, vector<1x128xf32>
    %21 = vector.broadcast %20 : vector<1x128xf32> to vector<8x128xf32>
    %22 = arith.addf %19, %21 : vector<8x128xf32>
    %cst_17 = arith.constant 0.000000e+00 : f32
    %23 = vector.broadcast %cst_17 : f32 to vector<8x128xf32>
    %24 = arith.maximumf %22, %23 : vector<8x128xf32>
    %25 = arith.truncf %24 : vector<8x128xf32> to vector<8x128xbf16>
    %c0_18 = arith.constant 0 : index
    %c0_19 = arith.constant 0 : index
    %26 = vector.load %arg8[%c0_18, %c0_19] : memref<128x128xbf16, #tpu.memory_space<vmem>>, vector<128x128xbf16>
    %cst_20 = arith.constant dense<0.000000e+00> : vector<8x128xf32>
    %27 = tpu.matmul %25, %26, %cst_20 {dimension_numbers = #tpu.dot_dimension_numbers<[1], [0], [0], [1], [0, 0, 1, 1], [], []>} : vector<8x128xbf16>, vector<128x128xbf16>, vector<8x128xf32> -> vector<8x128xf32>
    %c0_21 = arith.constant 0 : index
    %c0_22 = arith.constant 0 : index
    %28 = vector.load %arg9[%c0_21, %c0_22] : memref<1x128xf32, #tpu.memory_space<vmem>>, vector<1x128xf32>
    %29 = vector.broadcast %28 : vector<1x128xf32> to vector<8x128xf32>
    %30 = arith.addf %27, %29 : vector<8x128xf32>
    %cst_23 = arith.constant dense<0xFF800000> : vector<8xf32>
    %31 = vector.multi_reduction <maximumf>, %30, %cst_23 [1] : vector<8x128xf32> to vector<8xf32>
    %32 = vector.shape_cast %31 : vector<8xf32> to vector<8x1xf32>
    %33 = vector.broadcast %32 : vector<8x1xf32> to vector<8x128xf32>
    %34 = arith.subf %30, %33 : vector<8x128xf32>
    %35 = math.exp %34 : vector<8x128xf32>
    %cst_24 = arith.constant dense<0.000000e+00> : vector<8xf32>
    %36 = vector.multi_reduction <add>, %35, %cst_24 [1] : vector<8x128xf32> to vector<8xf32>
    %37 = vector.shape_cast %36 : vector<8xf32> to vector<8x1xf32>
    %38 = vector.broadcast %37 : vector<8x1xf32> to vector<8x128xf32>
    %39 = arith.divf %35, %38 : vector<8x128xf32>
    %c0_25 = arith.constant 0 : index
    %c0_26 = arith.constant 0 : index
    %40 = vector.load %arg10[%c0_25, %c0_26] : memref<8x128xf32, #tpu.memory_space<vmem>>, vector<8x128xf32>
    tpu.vector_store %arg10[%c0_25, %c0_26], %39 {strides = array<i32>} : memref<8x128xf32, #tpu.memory_space<vmem>>, vector<8x128xf32>,
    return
  }
  func.func @transform_0(%arg0: i32) -> (i32, i32) {
    %c0_i32 = arith.constant 0 : i32
    %c0_i32_0 = arith.constant 0 : i32
    return %arg0, %c0_i32 : i32, i32
  }
  func.func @transform_1(%arg0: i32) -> (i32, i32) {
    %c0_i32 = arith.constant 0 : i32
    %c0_i32_0 = arith.constant 0 : i32
    %c0_i32_1 = arith.constant 0 : i32
    return %c0_i32, %c0_i32_0 : i32, i32
  }
  func.func @transform_2(%arg0: i32) -> (i32, i32) {
    %c0_i32 = arith.constant 0 : i32
    %c0_i32_0 = arith.constant 0 : i32
    %c0_i32_1 = arith.constant 0 : i32
    return %c0_i32, %c0_i32_0 : i32, i32
  }
  func.func @transform_3(%arg0: i32) -> (i32, i32) {
    %c0_i32 = arith.constant 0 : i32
    %c0_i32_0 = arith.constant 0 : i32
    %c0_i32_1 = arith.constant 0 : i32
    return %c0_i32, %c0_i32_0 : i32, i32
  }
  func.func @transform_4(%arg0: i32) -> (i32, i32) {
    %c0_i32 = arith.constant 0 : i32
    %c0_i32_0 = arith.constant 0 : i32
    %c0_i32_1 = arith.constant 0 : i32
    return %c0_i32, %c0_i32_0 : i32, i32
  }
  func.func @transform_5(%arg0: i32) -> (i32, i32) {
    %c0_i32 = arith.constant 0 : i32
    %c0_i32_0 = arith.constant 0 : i32
    %c0_i32_1 = arith.constant 0 : i32
    return %c0_i32, %c0_i32_0 : i32, i32
  }
  func.func @transform_6(%arg0: i32) -> (i32, i32) {
    %c0_i32 = arith.constant 0 : i32
    %c0_i32_0 = arith.constant 0 : i32
    %c0_i32_1 = arith.constant 0 : i32
    return %c0_i32, %c0_i32_0 : i32, i32
  }
  func.func @transform_7(%arg0: i32) -> (i32, i32) {
    %c0_i32 = arith.constant 0 : i32
    %c0_i32_0 = arith.constant 0 : i32
    %c0_i32_1 = arith.constant 0 : i32
    return %c0_i32, %c0_i32_0 : i32, i32
  }
  func.func @transform_8(%arg0: i32) -> (i32, i32) {
    %c0_i32 = arith.constant 0 : i32
    %c0_i32_0 = arith.constant 0 : i32
    %c0_i32_1 = arith.constant 0 : i32
    return %c0_i32, %c0_i32_0 : i32, i32
  }
  func.func @transform_9(%arg0: i32) -> (i32, i32) {
    %c0_i32 = arith.constant 0 : i32
    %c0_i32_0 = arith.constant 0 : i32
    return %arg0, %c0_i32 : i32, i32
  }
}

</mosaic_0001>

<bundles_post_ra>
// kernel: tpu_custom_call.1
= control target key start
LH: loop header
LB: loop body
LE: loop exit
PB: predicated region body
PF: predicated region fallthrough
CT: control target
= control target key end

     0   :  { %14 = vsyncpa [#allocation3], 0  ;;  %s1837_s0 = inlined_call_operand.hbm [shape: f32[8,128], index: 0, kind: input, shape index: {}]   ;;  %s1838_s1 = inlined_call_operand.hbm [shape: bf16[128,512], index: 1, kind: input, shape index: {}]   ;;  %s1839_s2 = inlined_call_operand.hbm [shape: f32[1,512], index: 2, kind: input, shape index: {}]   ;;  %s1840_s3 = inlined_call_operand.hbm [shape: bf16[512,256], index: 3, kind: input, shape index: {}]   ;;  %s1841_s4 = inlined_call_operand.vmem [shape: f32[1,256], index: 4, kind: input, shape index: {}]   ;;  %s1842_s5 = inlined_call_operand.hbm [shape: bf16[256,128], index: 5, kind: input, shape index: {}]   ;;  %s1843_s6 = inlined_call_operand.vmem [shape: f32[1,128], index: 6, kind: input, shape index: {}]   ;;  %s1844_s7 = inlined_call_operand.hbm [shape: bf16[128,128], index: 7, kind: input, shape index: {}]   ;;  %s1845_s8 = inlined_call_operand.vmem [shape: f32[1,128], index: 8, kind: input, shape index: {}]   ;;  %s1846_s9 = inlined_call_operand.hbm [shape: f32[8,128], index: 9, kind: output, shape index: {}]  }
   0x1   :  { %15 = vsyncpa [#allocation6], 0 }
   0x2   :  { %16 = vsyncpa [#allocation9], 0 }
   0x3   :  { %17 = vsyncpa [#allocation12], 0 }
   0x4   :  { %18 = vsyncpa [#allocation4], 0  ;;  %s1727_s30 = smov [#allocation5]  }
   0x5   :  { %s34_s10 = sshll.u32 %s1727_s30, 4  ;;  %s35_s10 = int_to_ptr.vmem [resolvable:$true] %s34_s10 }
   0x6   :  { %s1585_s11 = scalar_lea.vmem %s35_s10, 4096  ;;  %p1590_p1 = scmp.lt.s32.totalorder %s35_s10, %s35_s10 }
   0x7   :  { %p1586_p0 = scmp.ne.s32.totalorder %s35_s10, %s1585_s11  ;;  %p1591_p2 = scmp.lt.s32.totalorder %s1585_s11, %s1585_s11 }
   0x9   :  { %p1592_p3 = por %p1591_p2, %p1590_p1 }
   0xb   :  { %p1593_p4 = pnand %p1592_p3, %p1586_p0 }
   0xd   :  { %1596 = shalt.err (!%p1593_p4)
}
   0xe   :  { %s1728_s12 = smov 256   ;;  %s1729_s13 = smov 16  }
   0xf   :  { %40 = dma.hbm_to_vmem [thread:$0]  %s1838_s1, 4096, %s35_s10, [#allocation6], %s1728_s12, %s1728_s12, %s1729_s13  }
  0x10   :  { %s1730_s16 = smov [#allocation8]  }
  0x11   :  { %s56_s17 = sshll.u32 %s1730_s16, 4  ;;  %s57_s17 = int_to_ptr.vmem [resolvable:$true] %s56_s17 }
  0x12   :  { %s1605_s18 = scalar_lea.vmem %s57_s17, 8192  ;;  %p1610_p6 = scmp.lt.s32.totalorder %s57_s17, %s57_s17 }
  0x13   :  { %p1606_p5 = scmp.ne.s32.totalorder %s57_s17, %s1605_s18  ;;  %p1611_p7 = scmp.lt.s32.totalorder %s1605_s18, %s1605_s18 }
  0x15   :  { %p1612_p8 = por %p1611_p7, %p1610_p6 }
  0x17   :  { %p1613_p9 = pnand %p1612_p8, %p1606_p5 }
  0x19   :  { %1616 = shalt.err (!%p1613_p9)
}
  0x1a   :  { %s1731_s19 = smov 128   ;;  %s1732_s20 = smov 8  }
  0x1b   :  { %62 = dma.hbm_to_vmem [thread:$0]  %s1840_s3, 8192, %s57_s17, [#allocation9], %s1731_s19, %s1731_s19, %s1732_s20  }
  0x1c   :  { %s1733_s23 = smov [#allocation2]   ;;  %s1734_s25 = smov [#allocation7]  }
  0x1d   :  { %s25_s24 = sshll.u32 %s1733_s23, 4  ;;  %s47_s1 = sshll.u32 %s1734_s25, 4  ;;  %s26_s24 = int_to_ptr.vmem [resolvable:$true] %s25_s24  ;;  %s48_s1 = int_to_ptr.vmem [resolvable:$true] %s47_s1 }
  0x1e   :  { %s1625_s26 = scalar_lea.vmem %s26_s24, 128  ;;  %p1630_p11 = scmp.lt.s32.totalorder %s26_s24, %s26_s24 }
  0x1f   :  { %p1626_p10 = scmp.ne.s32.totalorder %s26_s24, %s1625_s26  ;;  %p1631_p12 = scmp.lt.s32.totalorder %s1625_s26, %s1625_s26 }
  0x21   :  { %p1632_p13 = por %p1631_p12, %p1630_p11 }
  0x23   :  { %p1633_p0 = pnand %p1632_p13, %p1626_p10 }
  0x25   :  { %1636 = shalt.err (!%p1633_p0)
}
  0x26   :  { %28 = dma.hbm_to_vmem [thread:$0]  %s1837_s0, 128, %s26_s24, [#allocation3]  }
  0x27   :  { %s1645_s29 = scalar_lea.vmem %s48_s1, 64  ;;  %p1650_p2 = scmp.lt.s32.totalorder %s48_s1, %s48_s1 }
  0x28   :  { %p1646_p1 = scmp.ne.s32.totalorder %s48_s1, %s1645_s29  ;;  %p1651_p3 = scmp.lt.s32.totalorder %s1645_s29, %s1645_s29 }
  0x2a   :  { %p1652_p4 = por %p1651_p3, %p1650_p2 }
  0x2c   :  { %p1653_p5 = pnand %p1652_p4, %p1646_p1 }
  0x2e   :  { %1656 = shalt.err (!%p1653_p5)
}
  0x2f   :  { %50 = dma.hbm_to_vmem [thread:$0]  %s1839_s2, 64, %s48_s1, [#allocation6]  }
  0x30   :  { %s1735_s10 = smov [#allocation10]  }
  0x31   :  { %s70_s11 = sshll.u32 %s1735_s10, 4  ;;  %s71_s11 = int_to_ptr.vmem [resolvable:$true] %s70_s11 }
  0x32   :  { %s1665_s12 = scalar_lea.vmem %s71_s11, 2048  ;;  %p1670_p7 = scmp.lt.s32.totalorder %s71_s11, %s71_s11 }
  0x33   :  { %p1666_p6 = scmp.ne.s32.totalorder %s71_s11, %s1665_s12  ;;  %p1671_p8 = scmp.lt.s32.totalorder %s1665_s12, %s1665_s12 }
  0x35   :  { %p1672_p9 = por %p1671_p8, %p1670_p7 }
  0x37   :  { %p1673_p10 = pnand %p1672_p9, %p1666_p6 }
  0x39   :  { %1676 = shalt.err (!%p1673_p10)
}
  0x3a   :  { %s1736_s0 = smov 64   ;;  %s1737_s13 = smov 4  }
  0x3b   :  { %76 = dma.hbm_to_vmem [thread:$0]  %s1842_s5, 2048, %s71_s11, [#allocation9], %s1736_s0, %s1736_s0, %s1737_s13  }
  0x3c   :  { %s1738_s16 = smov [#allocation11]  }
  0x3d   :  { %s84_s17 = sshll.u32 %s1738_s16, 4  ;;  %s85_s17 = int_to_ptr.vmem [resolvable:$true] %s84_s17 }
  0x3e   :  { %s1685_s2 = scalar_lea.vmem %s85_s17, 1024  ;;  %p1690_p12 = scmp.lt.s32.totalorder %s85_s17, %s85_s17 }
  0x3f   :  { %p1686_p11 = scmp.ne.s32.totalorder %s85_s17, %s1685_s2  ;;  %p1691_p13 = scmp.lt.s32.totalorder %s1685_s2, %s1685_s2 }
  0x41   :  { %p1692_p0 = por %p1691_p13, %p1690_p12 }
  0x43   :  { %p1693_p1 = pnand %p1692_p0, %p1686_p11 }
  0x45   :  { %1696 = shalt.err (!%p1693_p1)
}
  0x46   :  { %90 = dma.hbm_to_vmem [thread:$0]  %s1844_s7, 1024, %s85_s17, [#allocation12], %s1736_s0, %s1736_s0, %s1737_s13  }
  0x47   :  { %1717 = dma.done.wait [#allocation3], 128  }
  0x48   :  { %1718 = vsyncadd [#allocation3], 4294967168 }
  0x49   :  { %1719 = dma.done.wait [#allocation6], 4160  }
  0x4a   :  { %1720 = vsyncadd [#allocation6], 4294963136 }
  0x4b   :  { %1721 = dma.done.wait [#allocation9], 10240  }
  0x4c   :  { %1722 = vsyncadd [#allocation9], 4294957056 }
  0x4d   :  { %1723 = dma.done.wait [#allocation12], 1024  }
  0x4e   :  { %1724 = vsyncadd [#allocation12], 4294966272  ;;  %v1739_v0 = vmov 0   ;;  %v1405_v1 = vld [vmem:[#allocation5 + $0xe4] ss:$16 sps:$4 sm:$0xff]   ;;  %v112_v33 = vld [vmem:[#allocation2] sm:$0xff] }
  0x4f   :  { %360 = vmatprep.mubr.bf16.mxu0 %v1739_v0  ;;  %401 = vmatprep.mubr.bf16.mxu1 %v1739_v0  ;;  %v1407_v2 = vld [vmem:[#allocation5 + $0xec] ss:$16 sps:$4 sm:$0xff]   ;;  %v1409_v3 = vld [vmem:[#allocation5 + $0xe0] ss:$16 sps:$4 sm:$0xff]   ;;  %v1410_v4 = vld [vmem:[#allocation5 + $0xe8] ss:$16 sps:$4 sm:$0xff]   ;;  %v113_v36 = vpack.c.bf16 %v112_v33, %v112_v33 }
  0x50   :  { %328 = vmatprep.subr.bf16.mxu0 %v1405_v1  ;;  %369 = vmatprep.subr.bf16.mxu1 %v1407_v2  ;;  %v1411_v5 = vld [vmem:[#allocation5 + $0xc4] ss:$16 sps:$4 sm:$0xff]   ;;  %v1413_v6 = vld [vmem:[#allocation5 + $0xcc] ss:$16 sps:$4 sm:$0xff]   ;;  %v1415_v7 = vld [vmem:[#allocation5 + $0xc0] ss:$16 sps:$4 sm:$0xff]  }
  0x51   :  { %329 = vmatpush1.bf16.msra.mxu0 %v1409_v3  ;;  %370 = vmatpush1.bf16.msra.mxu1 %v1410_v4  ;;  %v1416_v8 = vld [vmem:[#allocation5 + $0xc8] ss:$16 sps:$4 sm:$0xff]   ;;  %v1417_v9 = vld [vmem:[#allocation5 + $0xa4] ss:$16 sps:$4 sm:$0xff]   ;;  %v1419_v10 = vld [vmem:[#allocation5 + $0xac] ss:$16 sps:$4 sm:$0xff]  }
  0x52   :  { %330 = vmatprep.subr.bf16.mxu0 %v1411_v5  ;;  %371 = vmatprep.subr.bf16.mxu1 %v1413_v6  ;;  %v1421_v11 = vld [vmem:[#allocation5 + $0xa0] ss:$16 sps:$4 sm:$0xff]   ;;  %v1422_v12 = vld [vmem:[#allocation5 + $0xa8] ss:$16 sps:$4 sm:$0xff]   ;;  %v1423_v13 = vld [vmem:[#allocation5 + $0x84] ss:$16 sps:$4 sm:$0xff]  }
  0x53   :  { %v1425_v14 = vld [vmem:[#allocation5 + $0x8c] ss:$16 sps:$4 sm:$0xff]   ;;  %v1427_v15 = vld [vmem:[#allocation5 + $0x80] ss:$16 sps:$4 sm:$0xff]   ;;  %v1428_v16 = vld [vmem:[#allocation5 + $0x88] ss:$16 sps:$4 sm:$0xff]  }
  0x54   :  { %v1429_v17 = vld [vmem:[#allocation5 + $0x64] ss:$16 sps:$4 sm:$0xff]   ;;  %v1431_v18 = vld [vmem:[#allocation5 + $0x6c] ss:$16 sps:$4 sm:$0xff]   ;;  %v1433_v19 = vld [vmem:[#allocation5 + $0x60] ss:$16 sps:$4 sm:$0xff]  }
  0x55   :  { %331 = vmatpush1.bf16.msra.mxu0 %v1415_v7  ;;  %372 = vmatpush1.bf16.msra.mxu1 %v1416_v8  ;;  %v1434_v20 = vld [vmem:[#allocation5 + $0x68] ss:$16 sps:$4 sm:$0xff]   ;;  %v1435_v21 = vld [vmem:[#allocation5 + $0x44] ss:$16 sps:$4 sm:$0xff]   ;;  %v1437_v22 = vld [vmem:[#allocation5 + $0x4c] ss:$16 sps:$4 sm:$0xff]  }
  0x56   :  { %332 = vmatprep.subr.bf16.mxu0 %v1417_v9  ;;  %373 = vmatprep.subr.bf16.mxu1 %v1419_v10  ;;  %v1439_v23 = vld [vmem:[#allocation5 + $0x40] ss:$16 sps:$4 sm:$0xff]   ;;  %v1440_v24 = vld [vmem:[#allocation5 + $0x48] ss:$16 sps:$4 sm:$0xff]   ;;  %v1441_v25 = vld [vmem:[#allocation5 + $0x24] ss:$16 sps:$4 sm:$0xff]  }
  0x57   :  { %v1443_v26 = vld [vmem:[#allocation5 + $0x2c] ss:$16 sps:$4 sm:$0xff]   ;;  %v1445_v27 = vld [vmem:[#allocation5 + $0x20] ss:$16 sps:$4 sm:$0xff]   ;;  %v1446_v28 = vld [vmem:[#allocation5 + $0x28] ss:$16 sps:$4 sm:$0xff]  }
  0x58   :  { %v1447_v29 = vld [vmem:[#allocation5 + $0x4] ss:$16 sps:$4 sm:$0xff]   ;;  %v1449_v30 = vld [vmem:[#allocation5 + $0xc] ss:$16 sps:$4 sm:$0xff]   ;;  %v1451_v31 = vld [vmem:[#allocation5] ss:$16 sps:$4 sm:$0xff]  }
  0x59   :  { %333 = vmatpush1.bf16.msra.mxu0 %v1421_v11  ;;  %374 = vmatpush1.bf16.msra.mxu1 %v1422_v12  ;;  %v1452_v32 = vld [vmem:[#allocation5 + $0x8] ss:$16 sps:$4 sm:$0xff]   ;;  %v1453_v37 = vld [vmem:[#allocation8 + $0x70] ss:$8 sps:$4 sm:$0xff]   ;;  %v1459_v41 = vld [vmem:[#allocation8 + $0x60] ss:$8 sps:$4 sm:$0xff]  }
  0x5a   :  { %334 = vmatprep.subr.bf16.mxu0 %v1423_v13  ;;  %375 = vmatprep.subr.bf16.mxu1 %v1425_v14  ;;  %v1455_v34 = vld [vmem:[#allocation8 + $0x74] ss:$8 sps:$4 sm:$0xff]   ;;  %v1456_v38 = vld [vmem:[#allocation8 + $0x170] ss:$8 sps:$4 sm:$0xff]   ;;  %v1461_v39 = vld [vmem:[#allocation8 + $0x64] ss:$8 sps:$4 sm:$0xff]  }
  0x5b   :  { %v1458_v35 = vld [vmem:[#allocation8 + $0x174] ss:$8 sps:$4 sm:$0xff]   ;;  %v1464_v40 = vld [vmem:[#allocation8 + $0x164] ss:$8 sps:$4 sm:$0xff]   ;;  %v1462_v42 = vld [vmem:[#allocation8 + $0x160] ss:$8 sps:$4 sm:$0xff]  }
  0x5c   :  { %v1467_v43 = vld [vmem:[#allocation8 + $0x54] ss:$8 sps:$4 sm:$0xff]   ;;  %v1465_v45 = vld [vmem:[#allocation8 + $0x50] ss:$8 sps:$4 sm:$0xff]   ;;  %v1473_v47 = vld [vmem:[#allocation8 + $0x44] ss:$8 sps:$4 sm:$0xff]  }
  0x5d   :  { %335 = vmatpush1.bf16.msra.mxu0 %v1427_v15  ;;  %376 = vmatpush1.bf16.msra.mxu1 %v1428_v16  ;;  %v1470_v44 = vld [vmem:[#allocation8 + $0x154] ss:$8 sps:$4 sm:$0xff]   ;;  %v1468_v46 = vld [vmem:[#allocation8 + $0x150] ss:$8 sps:$4 sm:$0xff]   ;;  %v1476_v48 = vld [vmem:[#allocation8 + $0x144] ss:$8 sps:$4 sm:$0xff]  }
  0x5e   :  { %336 = vmatprep.subr.bf16.mxu0 %v1429_v17  ;;  %377 = vmatprep.subr.bf16.mxu1 %v1431_v18  ;;  %v1471_v49 = vld [vmem:[#allocation8 + $0x40] ss:$8 sps:$4 sm:$0xff]   ;;  %v1479_v51 = vld [vmem:[#allocation8 + $0x34] ss:$8 sps:$4 sm:$0xff]   ;;  %v1477_v53 = vld [vmem:[#allocation8 + $0x30] ss:$8 sps:$4 sm:$0xff]  }
  0x5f   :  { %v1474_v50 = vld [vmem:[#allocation8 + $0x140] ss:$8 sps:$4 sm:$0xff]   ;;  %v1482_v52 = vld [vmem:[#allocation8 + $0x134] ss:$8 sps:$4 sm:$0xff]   ;;  %v1480_v54 = vld [vmem:[#allocation8 + $0x130] ss:$8 sps:$4 sm:$0xff]  }
  0x60   :  { %v1485_v55 = vld [vmem:[#allocation8 + $0x24] ss:$8 sps:$4 sm:$0xff]   ;;  %v1483_v57 = vld [vmem:[#allocation8 + $0x20] ss:$8 sps:$4 sm:$0xff]   ;;  %v1491_v59 = vld [vmem:[#allocation8 + $0x14] ss:$8 sps:$4 sm:$0xff]  }
  0x61   :  { %337 = vmatpush1.bf16.msra.mxu0 %v1433_v19  ;;  %378 = vmatpush1.bf16.msra.mxu1 %v1434_v20  ;;  %v1488_v56 = vld [vmem:[#allocation8 + $0x124] ss:$8 sps:$4 sm:$0xff]   ;;  %v1486_v58 = vld [vmem:[#allocation8 + $0x120] ss:$8 sps:$4 sm:$0xff]   ;;  %v1494_v60 = vld [vmem:[#allocation8 + $0x114] ss:$8 sps:$4 sm:$0xff]  }
  0x62   :  { %338 = vmatprep.subr.bf16.mxu0 %v1435_v21  ;;  %379 = vmatprep.subr.bf16.mxu1 %v1437_v22  ;;  %v1489_v61 = vld [vmem:[#allocation8 + $0x10] ss:$8 sps:$4 sm:$0xff]   ;;  %v1497_v63 = vld [vmem:[#allocation8 + $0x4] ss:$8 sps:$4 sm:$0xff]   ;;  %v1495_v1 = vld [vmem:[#allocation8] ss:$8 sps:$4 sm:$0xff]  }
  0x63   :  { %v1492_v62 = vld [vmem:[#allocation8 + $0x110] ss:$8 sps:$4 sm:$0xff]   ;;  %v1500_v0 = vld [vmem:[#allocation8 + $0x104] ss:$8 sps:$4 sm:$0xff]   ;;  %v1498_v2 = vld [vmem:[#allocation8 + $0x100] ss:$8 sps:$4 sm:$0xff]  }
  0x64   :  { %v1503_v3 = vld [vmem:[#allocation8 + $0xf4] ss:$8 sps:$4 sm:$0xff]   ;;  %v1501_v5 = vld [vmem:[#allocation8 + $0xf0] ss:$8 sps:$4 sm:$0xff]   ;;  %v1509_v7 = vld [vmem:[#allocation8 + $0xe4] ss:$8 sps:$4 sm:$0xff]  }
  0x65   :  { %339 = vmatpush1.bf16.msra.mxu0 %v1439_v23  ;;  %380 = vmatpush1.bf16.msra.mxu1 %v1440_v24  ;;  %v1506_v4 = vld [vmem:[#allocation8 + $0x1f4] ss:$8 sps:$4 sm:$0xff]   ;;  %v1504_v6 = vld [vmem:[#allocation8 + $0x1f0] ss:$8 sps:$4 sm:$0xff]   ;;  %v1512_v8 = vld [vmem:[#allocation8 + $0x1e4] ss:$8 sps:$4 sm:$0xff]  }
  0x66   :  { %340 = vmatprep.subr.bf16.mxu0 %v1441_v25  ;;  %381 = vmatprep.subr.bf16.mxu1 %v1443_v26  ;;  %v1507_v9 = vld [vmem:[#allocation8 + $0xe0] ss:$8 sps:$4 sm:$0xff]   ;;  %v1515_v11 = vld [vmem:[#allocation8 + $0xd4] ss:$8 sps:$4 sm:$0xff]   ;;  %v1513_v13 = vld [vmem:[#allocation8 + $0xd0] ss:$8 sps:$4 sm:$0xff]  }
  0x67   :  { %v1510_v10 = vld [vmem:[#allocation8 + $0x1e0] ss:$8 sps:$4 sm:$0xff]   ;;  %v1518_v12 = vld [vmem:[#allocation8 + $0x1d4] ss:$8 sps:$4 sm:$0xff]   ;;  %v1516_v14 = vld [vmem:[#allocation8 + $0x1d0] ss:$8 sps:$4 sm:$0xff]  }
  0x68   :  { %v1521_v15 = vld [vmem:[#allocation8 + $0xc4] ss:$8 sps:$4 sm:$0xff]   ;;  %v1519_v17 = vld [vmem:[#allocation8 + $0xc0] ss:$8 sps:$4 sm:$0xff]   ;;  %v1527_v19 = vld [vmem:[#allocation8 + $0xb4] ss:$8 sps:$4 sm:$0xff]  }
  0x69   :  { %341 = vmatpush1.bf16.msra.mxu0 %v1445_v27  ;;  %382 = vmatpush1.bf16.msra.mxu1 %v1446_v28  ;;  %v1524_v16 = vld [vmem:[#allocation8 + $0x1c4] ss:$8 sps:$4 sm:$0xff]   ;;  %v1522_v18 = vld [vmem:[#allocation8 + $0x1c0] ss:$8 sps:$4 sm:$0xff]   ;;  %v1530_v20 = vld [vmem:[#allocation8 + $0x1b4] ss:$8 sps:$4 sm:$0xff]  }
  0x6a   :  { %342 = vmatprep.subr.bf16.mxu0 %v1447_v29  ;;  %383 = vmatprep.subr.bf16.mxu1 %v1449_v30  ;;  %v1525_v21 = vld [vmem:[#allocation8 + $0xb0] ss:$8 sps:$4 sm:$0xff]   ;;  %v1533_v23 = vld [vmem:[#allocation8 + $0xa4] ss:$8 sps:$4 sm:$0xff]   ;;  %v1531_v25 = vld [vmem:[#allocation8 + $0xa0] ss:$8 sps:$4 sm:$0xff]  }
  0x6b   :  { %v1528_v22 = vld [vmem:[#allocation8 + $0x1b0] ss:$8 sps:$4 sm:$0xff]   ;;  %v1536_v24 = vld [vmem:[#allocation8 + $0x1a4] ss:$8 sps:$4 sm:$0xff]   ;;  %v1534_v26 = vld [vmem:[#allocation8 + $0x1a0] ss:$8 sps:$4 sm:$0xff]  }
  0x6c   :  { %v1539_v27 = vld [vmem:[#allocation8 + $0x94] ss:$8 sps:$4 sm:$0xff]   ;;  %v1537_v29 = vld [vmem:[#allocation8 + $0x90] ss:$8 sps:$4 sm:$0xff]   ;;  %v1543_v33 = vld [vmem:[#allocation8 + $0x80] ss:$8 sps:$4 sm:$0xff]  }
  0x6d   :  { %343 = vmatpush1.bf16.msra.mxu0 %v1451_v31  ;;  %384 = vmatpush1.bf16.msra.mxu1 %v1452_v32  ;;  %v1542_v28 = vld [vmem:[#allocation8 + $0x194] ss:$8 sps:$4 sm:$0xff]   ;;  %v1540_v30 = vld [vmem:[#allocation8 + $0x190] ss:$8 sps:$4 sm:$0xff]   ;;  %v1545_v31 = vld [vmem:[#allocation8 + $0x84] ss:$8 sps:$4 sm:$0xff]  }
  0x6e   :  { %814 = vmatprep.subr.bf16.mxu0 %v1455_v34  ;;  %855 = vmatprep.subr.bf16.mxu1 %v1458_v35  ;;  %v1548_v32 = vld [vmem:[#allocation8 + $0x184] ss:$8 sps:$4 sm:$0xff]   ;;  %v1546_v34 = vld [vmem:[#allocation8 + $0x180] ss:$8 sps:$4 sm:$0xff]   ;;  %v1549_v35 = vld [vmem:[#allocation10 + $0x78] sm:$0xff]   ;;  %vm1741_vm0 = vmmov 0  }
  0x70   :  { %361 = vmatmul.mubr.bf16.vlgmr.msra.gmra.mxu0 %v113_v36  ;;  %402 = vmatmul.mubr.bf16.vlgmr.msra.gmra.mxu1 %v113_v36  ;;  %v148_v36 = vlaneseq }
  0x71   :  { %815 = vmatpush1.bf16.msra.mxu0 %v1453_v37  ;;  %856 = vmatpush1.bf16.msra.mxu1 %v1456_v38 }
  0x72   :  { %816 = vmatprep.subr.bf16.mxu0 %v1461_v39  ;;  %857 = vmatprep.subr.bf16.mxu1 %v1464_v40  ;;  %v1811_v37 = vshrl.u32 %v148_v36, 7  ;;  %v146_v40 = vld [vmem:[#allocation7] sm:$0xf] }
  0x74   :  { %v150_v38 = vsub.s32 0, %v1811_v37  ;;  %v158_v39 = vsub.s32 2, %v1811_v37 }
  0x75   :  { %817 = vmatpush1.bf16.msra.mxu0 %v1459_v41  ;;  %858 = vmatpush1.bf16.msra.mxu1 %v1462_v42  ;;  %v154_v41 = vsub.s32 1, %v1811_v37  ;;  %v162_v42 = vsub.s32 3, %v1811_v37  ;;  %v1570_v37 = vld [vmem:[#allocation11 + $0x10] sm:$0xff]  }
  0x76   :  { %818 = vmatprep.subr.bf16.mxu0 %v1467_v43  ;;  %859 = vmatprep.subr.bf16.mxu1 %v1470_v44  ;;  %v151_v43 = vrot.slane %v146_v40, %v150_v38  ;;  %v159_v44 = vrot.slane %v146_v40, %v158_v39 }
  0x79   :  { %819 = vmatpush1.bf16.msra.mxu0 %v1465_v45  ;;  %860 = vmatpush1.bf16.msra.mxu1 %v1468_v46  ;;  %v155_v45 = vrot.slane %v146_v40, %v154_v41  ;;  %v163_v46 = vrot.slane %v146_v40, %v162_v42 }
  0x7a   :  { %820 = vmatprep.subr.bf16.mxu0 %v1473_v47  ;;  %861 = vmatprep.subr.bf16.mxu1 %v1476_v48 }
  0x7d   :  { %821 = vmatpush1.bf16.msra.mxu0 %v1471_v49  ;;  %862 = vmatpush1.bf16.msra.mxu1 %v1474_v50 }
  0x7e   :  { %822 = vmatprep.subr.bf16.mxu0 %v1479_v51  ;;  %863 = vmatprep.subr.bf16.mxu1 %v1482_v52 }
  0x81   :  { %823 = vmatpush1.bf16.msra.mxu0 %v1477_v53  ;;  %864 = vmatpush1.bf16.msra.mxu1 %v1480_v54 }
  0x82   :  { %824 = vmatprep.subr.bf16.mxu0 %v1485_v55  ;;  %865 = vmatprep.subr.bf16.mxu1 %v1488_v56 }
  0x85   :  { %825 = vmatpush1.bf16.msra.mxu0 %v1483_v57  ;;  %866 = vmatpush1.bf16.msra.mxu1 %v1486_v58 }
  0x86   :  { %826 = vmatprep.subr.bf16.mxu0 %v1491_v59  ;;  %867 = vmatprep.subr.bf16.mxu1 %v1494_v60 }
  0x89   :  { %827 = vmatpush1.bf16.msra.mxu0 %v1489_v61  ;;  %868 = vmatpush1.bf16.msra.mxu1 %v1492_v62 }
  0x8a   :  { %828 = vmatprep.subr.bf16.mxu0 %v1497_v63  ;;  %869 = vmatprep.subr.bf16.mxu1 %v1500_v0 }
  0x8d   :  { %829 = vmatpush1.bf16.msra.mxu0 %v1495_v1  ;;  %870 = vmatpush1.bf16.msra.mxu1 %v1498_v2  ;;  %v1550_v2 = vld [vmem:[#allocation10 + $0x38] sm:$0xff]  }
  0x8e   :  { %830 = vmatprep.subr.bf16.mxu0 %v1503_v3  ;;  %871 = vmatprep.subr.bf16.mxu1 %v1506_v4  ;;  %v1551_v4 = vld [vmem:[#allocation10 + $0x70] sm:$0xff]  }
  0x91   :  { %831 = vmatpush2.bf16.msra.mxu0 %v1501_v5  ;;  %872 = vmatpush2.bf16.msra.mxu1 %v1504_v6  ;;  %v1552_v5 = vld [vmem:[#allocation10 + $0x30] sm:$0xff]   ;;  %v1553_v6 = vld [vmem:[#allocation10 + $0x68] sm:$0xff]  }
  0x92   :  { %832 = vmatprep.subr.bf16.mxu0 %v1509_v7  ;;  %873 = vmatprep.subr.bf16.mxu1 %v1512_v8  ;;  %v1554_v7 = vld [vmem:[#allocation10 + $0x28] sm:$0xff]   ;;  %v1555_v8 = vld [vmem:[#allocation10 + $0x60] sm:$0xff]  }
  0x95   :  { %833 = vmatpush2.bf16.msra.mxu0 %v1507_v9  ;;  %874 = vmatpush2.bf16.msra.mxu1 %v1510_v10  ;;  %v1556_v9 = vld [vmem:[#allocation10 + $0x20] sm:$0xff]   ;;  %v1557_v10 = vld [vmem:[#allocation10 + $0x58] sm:$0xff]  }
  0x96   :  { %834 = vmatprep.subr.bf16.mxu0 %v1515_v11  ;;  %875 = vmatprep.subr.bf16.mxu1 %v1518_v12  ;;  %v1558_v11 = vld [vmem:[#allocation10 + $0x18] sm:$0xff]   ;;  %v1559_v12 = vld [vmem:[#allocation10 + $0x50] sm:$0xff]  }
  0x99   :  { %835 = vmatpush2.bf16.msra.mxu0 %v1513_v13  ;;  %876 = vmatpush2.bf16.msra.mxu1 %v1516_v14  ;;  %v1560_v13 = vld [vmem:[#allocation10 + $0x10] sm:$0xff]   ;;  %v1561_v14 = vld [vmem:[#allocation10 + $0x48] sm:$0xff]  }
  0x9a   :  { %836 = vmatprep.subr.bf16.mxu0 %v1521_v15  ;;  %877 = vmatprep.subr.bf16.mxu1 %v1524_v16  ;;  %v1562_v15 = vld [vmem:[#allocation10 + $0x8] sm:$0xff]   ;;  %v1563_v16 = vld [vmem:[#allocation10 + $0x40] sm:$0xff]  }
  0x9d   :  { %837 = vmatpush2.bf16.msra.mxu0 %v1519_v17  ;;  %878 = vmatpush2.bf16.msra.mxu1 %v1522_v18  ;;  %v1564_v17 = vld [vmem:[#allocation10] sm:$0xff]   ;;  %v1565_v18 = vld [vmem:[#allocation11 + $0x38] sm:$0xff]  }
  0x9e   :  { %838 = vmatprep.subr.bf16.mxu0 %v1527_v19  ;;  %879 = vmatprep.subr.bf16.mxu1 %v1530_v20  ;;  %v1740_v19 = vmov 0.0   ;;  %v1566_v20 = vld [vmem:[#allocation11 + $0x30] sm:$0xff]  }
  0xa1   :  { %839 = vmatpush2.bf16.msra.mxu0 %v1525_v21  ;;  %880 = vmatpush2.bf16.msra.mxu1 %v1528_v22  ;;  %v1567_v21 = vld [vmem:[#allocation11 + $0x28] sm:$0xff]   ;;  %v1568_v22 = vld [vmem:[#allocation11 + $0x20] sm:$0xff]  }
  0xa2   :  { %840 = vmatprep.subr.bf16.mxu0 %v1533_v23  ;;  %881 = vmatprep.subr.bf16.mxu1 %v1536_v24  ;;  %v1569_v23 = vld [vmem:[#allocation11 + $0x18] sm:$0xff]   ;;  %v482_v24 = vld [vmem:[%s1841_s4] sm:$0x3] }
  0xa5   :  { %841 = vmatpush2.bf16.msra.mxu0 %v1531_v25  ;;  %882 = vmatpush2.bf16.msra.mxu1 %v1534_v26  ;;  %v487_v25 = vrot.slane %v482_v24, %v150_v38  ;;  %v491_v26 = vrot.slane %v482_v24, %v154_v41  ;;  %v1571_v38 = vld [vmem:[#allocation11 + $0x8] sm:$0xff]   ;;  %v1572_v41 = vld [vmem:[#allocation11] sm:$0xff]  }
  0xa6   :  { %842 = vmatprep.subr.bf16.mxu0 %v1539_v27  ;;  %883 = vmatprep.subr.bf16.mxu1 %v1542_v28 }
  0xa9   :  { %843 = vmatpush2.bf16.msra.mxu0 %v1537_v29  ;;  %884 = vmatpush2.bf16.msra.mxu1 %v1540_v30 }
  0xaa   :  { %844 = vmatprep.subr.bf16.mxu0 %v1545_v31  ;;  %885 = vmatprep.subr.bf16.mxu1 %v1548_v32 }
  0xad   :  { %845 = vmatpush2.bf16.msra.mxu0 %v1543_v33  ;;  %886 = vmatpush2.bf16.msra.mxu1 %v1546_v34 }
  0xae   :  { %1338 = vmatprep.subr.bf16.mxu0 %v1549_v35  ;;  %1369 = vmatprep.subr.bf16.mxu1 %v1740_v19 }
 0x130   :  { %v362_v47 = vpop.f32.mrf.mxu0  ;;  %v403_v48 = vpop.f32.mrf.mxu1 }
 0x131   :  { %v363_v49 = vadd.f32 %v362_v47, %v151_v43  ;;  %v404_v50 = vadd.f32 %v403_v48, %v159_v44  ;;  %v1312_v47 = vld [vmem:[%s1843_s6] ss:$0 sm:$0xff]  ;;  %s1742_s6 = smov [#allocation13]  }
 0x132   :  { %v364_v51 = vpop.f32.mrf.mxu0  ;;  %v405_v52 = vpop.f32.mrf.mxu1  ;;  %s1204_s23 = sshll.u32 %s1742_s6, 4  ;;  %s1205_s23 = int_to_ptr.vmem [resolvable:$true] %s1204_s23 }
 0x133   :  { %v412_v53 = vmax.f32 %v404_v50, 0.0  ;;  %v365_v54 = vadd.f32 %v364_v51, %v155_v45  ;;  %v406_v55 = vadd.f32 %v405_v52, %v163_v46  ;;  %v410_v56 = vmax.f32 %v363_v49, 0.0  ;;  %p1702_p3 = scmp.lt.s32.totalorder %s1205_s23, %s1205_s23 }
 0x134   :  { %v366_v57 = vpop.f32.mrf.mxu0  ;;  %v407_v58 = vpop.f32.mrf.mxu1 }
 0x135   :  { %v411_v59 = vmax.f32 %v365_v54, 0.0  ;;  %v413_v60 = vmax.f32 %v406_v55, 0.0  ;;  %v416_v61 = vpack.c.bf16 %v412_v53, %v412_v53  ;;  %v414_v3 = vpack.c.bf16 %v410_v56, %v410_v56  ;;  %v1329_v55 = vld [vmem:[%s1845_s8] ss:$0 sm:$0xff]  ;;  %s1697_s8 = scalar_lea.vmem %s1205_s23, 128 }
 0x136   :  { %v367_v62 = vpop.f32.mrf.mxu0  ;;  %v408_v63 = vpop.f32.mrf.mxu1  ;;  %p1698_p2 = scmp.ne.s32.totalorder %s1205_s23, %s1697_s8  ;;  %p1703_p4 = scmp.lt.s32.totalorder %s1697_s8, %s1697_s8 }
 0x137   :  { %v415_v0 = vpack.c.bf16 %v411_v59, %v411_v59  ;;  %v417_v1 = vpack.c.bf16 %v413_v60, %v413_v60 }
 0x138   :  { %p1704_p5 = por %p1703_p4, %p1702_p3 }
 0x139   :  { %846 = vmatprep.mubr.bf16.mxu0 %v415_v0  ;;  %887 = vmatprep.mubr.bf16.mxu1 %v417_v1 }
 0x13a   :  { %847 = vmatmul.mubr.bf16.vlgmr.msra.gmra.mxu0 %v414_v3  ;;  %888 = vmatmul.mubr.bf16.vlgmr.msra.gmra.mxu1 %v416_v61  ;;  %p1705_p6 = pnand %p1704_p5, %p1698_p2 }
 0x13b   :  { %1339 = vmatpush3.bf16.msra.mxu0 %v1550_v2  ;;  %1370 = vmatpush3.bf16.msra.mxu1 %v1565_v18 }
 0x13c   :  { %1340 = vmatprep.subr.bf16.mxu0 %v1551_v4  ;;  %1371 = vmatprep.subr.bf16.mxu1 %v1740_v19 }
 0x13d   :  { %1385 = vmatprep.mubr.msk.bf16.mxu1 %vm1741_vm0, %v1740_v19 }
 0x13f   :  { %1341 = vmatpush3.bf16.msra.mxu0 %v1552_v5  ;;  %1372 = vmatpush3.bf16.msra.mxu1 %v1566_v20 }
 0x140   :  { %1342 = vmatprep.subr.bf16.mxu0 %v1553_v6  ;;  %1373 = vmatprep.subr.bf16.mxu1 %v1740_v19 }
 0x143   :  { %1343 = vmatpush3.bf16.msra.mxu0 %v1554_v7  ;;  %1374 = vmatpush3.bf16.msra.mxu1 %v1567_v21 }
 0x144   :  { %1344 = vmatprep.subr.bf16.mxu0 %v1555_v8  ;;  %1375 = vmatprep.subr.bf16.mxu1 %v1740_v19 }
 0x147   :  { %1345 = vmatpush3.bf16.msra.mxu0 %v1556_v9  ;;  %1376 = vmatpush3.bf16.msra.mxu1 %v1568_v22 }
 0x148   :  { %1346 = vmatprep.subr.bf16.mxu0 %v1557_v10  ;;  %1377 = vmatprep.subr.bf16.mxu1 %v1740_v19 }
 0x14b   :  { %1347 = vmatpush3.bf16.msra.mxu0 %v1558_v11  ;;  %1378 = vmatpush3.bf16.msra.mxu1 %v1569_v23 }
 0x14c   :  { %1348 = vmatprep.subr.bf16.mxu0 %v1559_v12  ;;  %1379 = vmatprep.subr.bf16.mxu1 %v1740_v19 }
 0x14f   :  { %1349 = vmatpush3.bf16.msra.mxu0 %v1560_v13  ;;  %1380 = vmatpush3.bf16.msra.mxu1 %v1570_v37 }
 0x150   :  { %1350 = vmatprep.subr.bf16.mxu0 %v1561_v14  ;;  %1381 = vmatprep.subr.bf16.mxu1 %v1740_v19 }
 0x153   :  { %1351 = vmatpush3.bf16.msra.mxu0 %v1562_v15  ;;  %1382 = vmatpush3.bf16.msra.mxu1 %v1571_v38 }
 0x154   :  { %1352 = vmatprep.subr.bf16.mxu0 %v1563_v16  ;;  %1383 = vmatprep.subr.bf16.mxu1 %v1740_v19 }
 0x157   :  { %1353 = vmatpush3.bf16.msra.mxu0 %v1564_v17  ;;  %1384 = vmatpush3.bf16.msra.mxu1 %v1572_v41 }
 0x1fa   :  { %v848_v27 = vpop.f32.mrf.mxu0  ;;  %v889_v28 = vpop.f32.mrf.mxu1 }
 0x1fb   :  { %v849_v29 = vadd.f32 %v848_v27, %v487_v25 }
 0x1fc   :  { %v850_v30 = vpop.f32.mrf.mxu0  ;;  %v891_v31 = vpop.f32.mrf.mxu1 }
 0x1fd   :  { %v890_v32 = vadd.f32 %v889_v28, %v849_v29  ;;  %v851_v33 = vadd.f32 %v850_v30, %v491_v26 }
 0x1fe   :  { %v852_v34 = vpop.f32.mrf.mxu0  ;;  %v893_v35 = vpop.f32.mrf.mxu1 }
 0x1ff   :  { %v892_v36 = vadd.f32 %v891_v31, %v851_v33  ;;  %v896_v39 = vmax.f32 %v890_v32, 0.0 }
 0x200   :  { %v853_v40 = vpop.f32.mrf.mxu0  ;;  %v894_v42 = vpop.f32.mrf.mxu1 }
 0x201   :  { %v897_v43 = vmax.f32 %v892_v36, 0.0  ;;  %v898_v45 = vpack.c.bf16 %v896_v39, %v896_v39 }
 0x203   :  { %v899_v44 = vpack.c.bf16 %v897_v43, %v897_v43 }
 0x205   :  { %1067 = vmatprep.mubr.bf16.mxu0 %v899_v44 }
 0x206   :  { %1068 = vmatmul.mubr.bf16.vlgmr.msra.gmra.mxu0 %v898_v45 }
 0x2c6   :  { %v1354_v46 = vpop.f32.mrf.mxu0 }
 0x2c8   :  { %v1355_v48 = vpop.f32.mrf.mxu0 }
 0x2c9   :  { %v1356_v49 = vadd.f32 %v1355_v48, %v1354_v46 }
 0x2ca   :  { %v1357_v50 = vpop.f32.mrf.mxu0 }
 0x2cb   :  { %v1070_v51 = vadd.f32 %v1356_v49, %v1312_v47 }
 0x2cc   :  { %v1358_v52 = vpop.f32.mrf.mxu0 }
 0x2cd   :  { %v1075_v53 = vmax.f32 %v1070_v51, 0.0 }
 0x2cf   :  { %v1076_v54 = vpack.c.bf16 %v1075_v53, %v1075_v53 }
 0x2d1   :  { %1386 = vmatmul.mubr.bf16.vlgmr.msra.gmra.mxu1 %v1076_v54 }
 0x391   :  { %v1182_v56 = vpop.f32.mrf.mxu1 }
 0x392   :  { %v1183_v57 = vadd.f32 %v1329_v55, %v1182_v56 }
 0x393   :  { %v1387_v58 = vpop.f32.mrf.mxu1 }
 0x394   :  { %1188 = vmax.xlane.f32.xlu0 %v1183_v57 }
 0x395   :  { %v1185_v59 = vpop.f32.mrf.mxu1 }
 0x397   :  { %v1388_v60 = vpop.f32.mrf.mxu1 }
 0x41d   :  { %v1189_v61 = vpop.xlane.xlu0 %1188 }
 0x41e   :  { %v1190_v62 = vsub.f32 %v1183_v57, %v1189_v61 }
 0x420   :  { %v1191_v63 = vmul.f32 1.442695, %v1190_v62 }
 0x422   :  { %1573 = vpow2.f32 %v1191_v63 }
 0x42f   :  { %v1574_v0 = vpop.eup %1573 }
 0x430   :  { %1193 = vadd.xlane.f32.xlu0 %v1574_v0 }
 0x4b9   :  { %v1194_v1 = vpop.xlane.xlu0 %1193 }
 0x4ba   :  { %1575 = vrcp.f32 %v1194_v1 }
 0x4c7   :  { %v1576_v2 = vpop.eup %1575 }
 0x4c8   :  { %v1196_v3 = vmul.f32 %v1576_v2, %v1574_v0 }
 0x4ca   :  { %1197 = vst [vmem:[#allocation13] sm:$0xff] %v1196_v3 }
 0x4cb   :  { %1708 = shalt.err (!%p1705_p6)
}
 0x4cc   :  { %1207 = dma.vmem_to_hbm [thread:$0]  %s1205_s23, 128, %s1846_s9, [#allocation4]  }
 0x4cd   :  { %1725 = dma.done.wait [#allocation4], 128  }
 0x4ce   :  { %1726 = vsyncadd [#allocation4], 4294967168 }
 0x4cf   :  { %1211 = vsyncpa [#allocation3], 1 }
 0x4d0   :  { %1212 = vsyncpa [#allocation6], 1 }
 0x4d1   :  { %1213 = vsyncpa [#allocation9], 1 }
 0x4d2   :  { %1214 = vsyncpa [#allocation12], 1 }
 0x4d3   :  { %1215 = vsyncpa [#allocation4], 1 }

</bundles_post_ra>
